<compile_context>
chip_gen: v6e
topology: v6e:2x2x1
jax: 0.10.0
libtpu: 0.0.40
codegen_flags: <defaults>
</compile_context>

<pallas_src>
import jax
import jax.numpy as jnp
from jax.experimental import pallas as pl
from jax.experimental.pallas import tpu as pltpu

_LANES = 128                        # vreg lane width
_SUBLANES = 8                       # vreg sublane height
_WIDE_COLS = 1024                   # lane width of the large-N slab (8 vregs)
_TILE_ROWS = 512                    # 512 x 1024 f32 = 2 MiB per block
_SINGLE_BLOCK_BYTES = 4 * 1024 * 1024   # slabs up to 4 MiB -> one block, no grid loop
_VMEM_LIMIT_BYTES = 32 * 1024 * 1024    # safe on v5e/v6e (128 MiB) and v7x (64 MiB)


def _poly_kernel(params_ref, x_ref, o_ref):
    # params_ref: (3,) float32 in SMEM -> a, b, c scalars (loop-invariant reads)
    a = params_ref[0]
    b = params_ref[1]
    c = params_ref[2]
    x = x_ref[...]                   # (tile_rows, cols) float32 in VMEM
    # Horner form: 2 muls + 2 adds on the VPU.
    o_ref[...] = (a * x + b) * x + c


def _round_up(v, m):
    return ((v + m - 1) // m) * m


def quadratic_forward(x, a, b, c):
    """x: arbitrary-shape float array; a, b, c: scalar float32 parameters."""
    orig_shape = x.shape
    orig_dtype = x.dtype
    n = x.size

    # Pack the three scalars once into a tiny SMEM vector.
    params = jnp.stack([a, b, c]).astype(jnp.float32).reshape(3)

    xf = jnp.ravel(x).astype(jnp.float32)

    # Lane-dense slab: last dim a multiple of 128 lanes, second-last a
    # multiple of 8 sublanes -> every tile is full vregs, all stores unmasked.
    cols = _WIDE_COLS if n >= _WIDE_COLS else _round_up(max(n, 1), _LANES)
    rows_needed = pl.cdiv(n, cols)

    if rows_needed * cols * 4 <= _SINGLE_BLOCK_BYTES:
        # Small/medium N: one block covering the whole slab (single grid step).
        rows = _round_up(rows_needed, _SUBLANES)
        tile_rows = rows
    else:
        # Large N: 2 MiB blocks streamed over a 1-D grid.
        rows = _round_up(rows_needed, _TILE_ROWS)
        tile_rows = _TILE_ROWS

    padded = rows * cols
    needs_pad = padded != n
    if needs_pad:
        xf = jnp.pad(xf, (0, padded - n))  # TODO(synk): masked tail store in-kernel
                                           # would avoid this extra HBM pass for ragged N.
    x2d = xf.reshape(rows, cols)

    grid = (rows // tile_rows,)

    out = pl.pallas_call(
        _poly_kernel,
        out_shape=jax.ShapeDtypeStruct((rows, cols), jnp.float32),
        grid=grid,
        in_specs=[
            pl.BlockSpec(memory_space=pltpu.MemorySpace.SMEM),        # params (a,b,c)
            pl.BlockSpec((tile_rows, cols), lambda i: (i, 0)),        # x tile
        ],
        out_specs=pl.BlockSpec((tile_rows, cols), lambda i: (i, 0)),
        compiler_params=pltpu.CompilerParams(
            dimension_semantics=("parallel",),
            vmem_limit_bytes=_VMEM_LIMIT_BYTES,
        ),
    )(params, x2d)

    out_flat = out.reshape(-1)
    if needs_pad:
        out_flat = out_flat[:n]
    return out_flat.reshape(orig_shape).astype(orig_dtype)


if __name__ == "__main__":
    # Input: torch.unsqueeze(torch.linspace(-1, 1, 50), dim=1) -> shape (50, 1)
    x = jnp.linspace(-1.0, 1.0, 50, dtype=jnp.float32).reshape(50, 1)

    # Deterministic parameter init (stand-in for torch.rand(1) in __init__).
    key = jax.random.PRNGKey(0)
    ka, kb, kc = jax.random.split(key, 3)
    a = jax.random.uniform(ka, (), dtype=jnp.float32)
    b = jax.random.uniform(kb, (), dtype=jnp.float32)
    c = jax.random.uniform(kc, (), dtype=jnp.float32)

    out = jax.jit(quadratic_forward)(x, a, b, c)
    out = jax.block_until_ready(out)

    # Correctness check against the pure-JAX reference.
    ref = x * x * a + x * b + c
    assert out.shape == (50, 1)
    assert jnp.allclose(out, ref, atol=1e-6), "mismatch vs reference"

    print("KERNEL_OK")
</pallas_src>

<mosaic_0001>
module attributes {stable_mosaic.version = 11 : i64} {
  func.func @_poly_kernel(%arg0: i32, %arg1: memref<3xf32, #tpu.memory_space<smem>>, %arg2: memref<8x128xf32, #tpu.memory_space<vmem>>, %arg3: memref<8x128xf32, #tpu.memory_space<vmem>>) attributes {dimension_semantics = [#tpu.dimension_semantics<parallel>], iteration_bounds = array<i64: 1>, scalar_prefetch = 0 : i64, scratch_operands = 0 : i64, tpu.core_type = #tpu.core_type<tc>, window_params = [{transform_indices = @transform_0, window_bounds = array<i64: 3>}, {transform_indices = @transform_1, window_bounds = array<i64: 8, 128>}, {transform_indices = @transform_2, window_bounds = array<i64: 8, 128>}]} {
    %c0 = arith.constant 0 : index
    %0 = memref.load %arg1[%c0] : memref<3xf32, #tpu.memory_space<smem>>
    %c1 = arith.constant 1 : index
    %1 = memref.load %arg1[%c1] : memref<3xf32, #tpu.memory_space<smem>>
    %c2 = arith.constant 2 : index
    %2 = memref.load %arg1[%c2] : memref<3xf32, #tpu.memory_space<smem>>
    %c0_0 = arith.constant 0 : index
    %c0_1 = arith.constant 0 : index
    %3 = vector.load %arg2[%c0_0, %c0_1] : memref<8x128xf32, #tpu.memory_space<vmem>>, vector<8x128xf32>
    %4 = vector.broadcast %0 : f32 to vector<8x128xf32>
    %5 = arith.mulf %4, %3 : vector<8x128xf32>
    %6 = vector.broadcast %1 : f32 to vector<8x128xf32>
    %7 = arith.addf %5, %6 : vector<8x128xf32>
    %8 = arith.mulf %7, %3 : vector<8x128xf32>
    %9 = vector.broadcast %2 : f32 to vector<8x128xf32>
    %10 = arith.addf %8, %9 : vector<8x128xf32>
    %c0_2 = arith.constant 0 : index
    %c0_3 = arith.constant 0 : index
    %11 = vector.load %arg3[%c0_2, %c0_3] : memref<8x128xf32, #tpu.memory_space<vmem>>, vector<8x128xf32>
    tpu.vector_store %arg3[%c0_2, %c0_3], %10 {strides = array<i32>} : memref<8x128xf32, #tpu.memory_space<vmem>>, vector<8x128xf32>,
    return
  }
  func.func @transform_0(%arg0: i32) -> i32 {
    %c0_i32 = arith.constant 0 : i32
    %c0_i32_0 = arith.constant 0 : i32
    return %c0_i32 : i32
  }
  func.func @transform_1(%arg0: i32) -> (i32, i32) {
    %c0_i32 = arith.constant 0 : i32
    %c0_i32_0 = arith.constant 0 : i32
    return %arg0, %c0_i32 : i32, i32
  }
  func.func @transform_2(%arg0: i32) -> (i32, i32) {
    %c0_i32 = arith.constant 0 : i32
    %c0_i32_0 = arith.constant 0 : i32
    return %arg0, %c0_i32 : i32, i32
  }
}

</mosaic_0001>

<bundles_post_ra>
// kernel: quadratic_forward.1
= control target key start
LH: loop header
LB: loop body
LE: loop exit
PB: predicated region body
PF: predicated region fallthrough
CT: control target
= control target key end

     0   :  { %7 = vsyncpa [#allocation3], 0  ;;  %s83_s0 = inlined_call_operand.vmem [shape: f32[3], index: 0, kind: input, shape index: {}]   ;;  %s84_s1 = inlined_call_operand.vmem [shape: f32[8,128], index: 1, kind: input, shape index: {}]   ;;  %s85_s2 = inlined_call_operand.vmem [shape: f32[8,128], index: 2, kind: output, shape index: {}]  }
   0x1   :  { %s14_s11 = sshll.u32 %s83_s0, 4  ;;  %s15_s11 = int_to_ptr.vmem [resolvable:$true] %s14_s11 }
   0x2   :  { %s44_s12 = scalar_lea.vmem %s15_s11, 16  ;;  %p49_p1 = scmp.lt.s32.totalorder %s15_s11, %s15_s11 }
   0x3   :  { %p45_p0 = scmp.ne.s32.totalorder %s15_s11, %s44_s12  ;;  %p50_p2 = scmp.lt.s32.totalorder %s44_s12, %s44_s12 }
   0x5   :  { %p51_p3 = por %p50_p2, %p49_p1 }
   0x7   :  { %p52_p4 = pnand %p51_p3, %p45_p0 }
   0x9   :  { %55 = shalt.err (!%p52_p4)
}
   0xa   :  { %s58_s13 = smov [#allocation2]  }
   0xb   :  { %17 = dma.vmem_to_smem %s15_s11, 16, %s58_s13, [#allocation3]  }
   0xc   :  { %56 = dma.done.wait [#allocation3], 16  }
   0xd   :  { %57 = vsyncadd [#allocation3], 4294967280 }
   0xe   :  { %23 = sfence }
   0xf   :  { %s24_s14 = sld [smem:[#allocation2]]  ;;  %v27_v0 = vld [vmem:[%s84_s1] sm:$0xff] }
  0x10   :  { %s41_s15 = sld [smem:[#allocation2 + $0x1]] }
  0x11   :  { %s42_s16 = sld [smem:[#allocation2 + $0x2]] }
  0x15   :  { %v28_v1 = vstv %s24_s14 }
  0x16   :  { %v29_v2 = vmul.f32 %v28_v1, %v27_v0  ;;  %v30_v3 = vstv %s41_s15 }
  0x17   :  { %v33_v5 = vstv %s42_s16 }
  0x18   :  { %v31_v4 = vadd.f32 %v30_v3, %v29_v2 }
  0x1a   :  { %v32_v6 = vmul.f32 %v31_v4, %v27_v0 }
  0x1c   :  { %v34_v7 = vadd.f32 %v33_v5, %v32_v6 }
  0x1e   :  { %35 = vst [vmem:[%s85_s2] sm:$0xff] %v34_v7 }
  0x1f   :  { %40 = vsyncpa [#allocation3], 1 }

</bundles_post_ra>
